<compile_context>
chip_gen: v7x
topology: tpu7x:2x2x1
jax: 0.10.0
libtpu: 0.0.40
codegen_flags: <defaults>
</compile_context>

<pallas_src>
import functools
import numpy as np

import jax
import jax.numpy as jnp
from jax import lax
from jax.experimental import pallas as pl
from jax.experimental.pallas import tpu as pltpu


# ----------------------------- Pallas kernels ------------------------------

@functools.lru_cache(maxsize=1)
def _tensorcores_per_chip():
    """1 TensorCore/chip on v5e/v6e, 2 on v7x (used to pick the N-tile count)."""
    try:
        kind = jax.devices()[0].device_kind.lower()
        if "v7" in kind or "7x" in kind:
            return 2
    except Exception:
        pass
    return 1


def _matmul_bias_kernel(x_ref, w_ref, b_ref, o_ref, *, relu):
    acc = jnp.dot(x_ref[...], w_ref[...], preferred_element_type=jnp.float32)
    acc = acc + b_ref[...]                      # (1,N) or (M,1) broadcast
    if relu:
        acc = jnp.maximum(acc, 0.0)
    o_ref[...] = acc.astype(o_ref.dtype)


def matmul_bias(x, w, b, *, relu=False, bias_per_row=False, out_dtype=jnp.float32):
    """(M,K) @ (K,N) + bias (+ReLU). bf16 MXU inputs, f32 accumulation, out_dtype store.

    Callers arrange shapes so N (the output lane axis) is >= 128 (lane-dense stores).
    N is split into one lane-dense block per TensorCore (1 on v5e/v6e, 2 on v7x) so the
    "parallel" grid buys megacore sharding without per-step pipeline overhead.
    """
    M, K = x.shape
    N = w.shape[1]
    xb = x.astype(jnp.bfloat16)
    wb = w.astype(jnp.bfloat16)

    n_tiles = _tensorcores_per_chip()
    if n_tiles > 1 and N % n_tiles == 0 and (N // n_tiles) % 128 == 0:
        tile_n = N // n_tiles
    else:
        tile_n = N                               # single lane-dense block (v5e/v6e)

    if bias_per_row:
        b2 = b.reshape(M, 1).astype(jnp.float32)
        b_spec = pl.BlockSpec((M, 1), lambda j: (0, 0))
    else:
        b2 = b.reshape(1, N).astype(jnp.float32)
        b_spec = pl.BlockSpec((1, tile_n), lambda j: (0, j))

    kernel = functools.partial(_matmul_bias_kernel, relu=relu)
    return pl.pallas_call(
        kernel,
        out_shape=jax.ShapeDtypeStruct((M, N), out_dtype),
        grid=(N // tile_n,),
        in_specs=[pl.BlockSpec((M, K), lambda j: (0, 0)),
                  pl.BlockSpec((K, tile_n), lambda j: (0, j)),
                  b_spec],
        out_specs=pl.BlockSpec((M, tile_n), lambda j: (0, j)),
        compiler_params=pltpu.CompilerParams(dimension_semantics=("parallel",)),
    )(xb, wb, b2)


def _lstm_decode_kernel(gx_ref, whh_ref, ow_ref, ob_ref, logits_ref, hbuf_ref, *, T, B, H):
    """Fused LSTM recurrence + hoisted vocab projection.

    gx_ref:  (T, B, 4H) bf16  precomputed x@W_ih + b  (hoisted input projection)
    whh_ref: (H, 4H)    bf16  recurrent weights
    ow_ref:  (H, V)     bf16  output projection
    ob_ref:  (1, V)     f32   output bias
    logits_ref: (T*B, V) f32  lane-dense output
    hbuf_ref:   (T*B, H) f32  VMEM scratch holding every h_t; the vocab matmul runs ONCE
                              after the recurrence on all T*B rows (MXU-occupancy win,
                              and keeps the per-step critical path to h@W_hh + gates).
    """
    def step(t, carry):
        h, c = carry
        gates = gx_ref[t].astype(jnp.float32) + jnp.dot(
            h.astype(jnp.bfloat16), whh_ref[...], preferred_element_type=jnp.float32)
        # PyTorch LSTM gate order: i, f, g, o  (H multiple of 128 -> lane-aligned slices)
        i = jax.nn.sigmoid(gates[:, 0 * H:1 * H])
        f = jax.nn.sigmoid(gates[:, 1 * H:2 * H])
        g = jnp.tanh(gates[:, 2 * H:3 * H])
        o = jax.nn.sigmoid(gates[:, 3 * H:4 * H])
        c = f * c + i * g
        h = o * jnp.tanh(c)
        row0 = pl.multiple_of(t * B, B)
        hbuf_ref[pl.ds(row0, B), :] = h
        return h, c

    h0 = jnp.zeros((B, H), jnp.float32)
    c0 = jnp.zeros((B, H), jnp.float32)
    unroll = True if T <= 32 else 4              # full unroll only while vregs fit
    lax.fori_loop(0, T, step, (h0, c0), unroll=unroll)

    # Hoisted vocab projection: one (T*B,H)@(H,V) matmul + lane-dense store.
    logits_ref[...] = (jnp.dot(hbuf_ref[...].astype(jnp.bfloat16), ow_ref[...],
                               preferred_element_type=jnp.float32) + ob_ref[...])


def lstm_decode(gates_x, w_hh, out_w, out_b):
    """gates_x: (T, B, 4H) time-major precomputed input gates -> logits (T*B, V)."""
    T, B, G = gates_x.shape
    H = w_hh.shape[0]
    V = out_w.shape[1]
    assert H % 128 == 0, "hidden size must be a multiple of 128 for lane-aligned gate slices"
    # TODO(synk): for large T*B or V, add a T-block / V-block grid axis (h/c carried in
    # VMEM scratch, 'arbitrary' semantics) so this all-resident grid=(1,) design stays
    # within v7x's 64 MiB VMEM (32 MiB default scoped limit).
    kernel = functools.partial(_lstm_decode_kernel, T=T, B=B, H=H)
    return pl.pallas_call(
        kernel,
        out_shape=jax.ShapeDtypeStruct((T * B, V), jnp.float32),
        grid=(1,),
        in_specs=[pl.BlockSpec((T, B, G), lambda i: (0, 0, 0)),
                  pl.BlockSpec((H, G), lambda i: (0, 0)),
                  pl.BlockSpec((H, V), lambda i: (0, 0)),
                  pl.BlockSpec((1, V), lambda i: (0, 0))],
        out_specs=pl.BlockSpec((T * B, V), lambda i: (0, 0)),
        scratch_shapes=[pltpu.VMEM((T * B, H), jnp.float32)],
        compiler_params=pltpu.CompilerParams(dimension_semantics=("arbitrary",)),
    )(gates_x.astype(jnp.bfloat16),
      w_hh.astype(jnp.bfloat16),
      out_w.astype(jnp.bfloat16),
      out_b.reshape(1, V).astype(jnp.float32))


# ------------------------------- JAX glue -----------------------------------

def im2col_cmajor(x_cbhw, ksize, stride, pad):
    """Channel-major im2col: (C,B,H,W) -> (C*K*K, B*Ho*Wo) with rows in (c,kh,kw) order.

    Built directly in the right order (stack on axis 1), so there is NO 5-D transpose and
    the wide B*Ho*Wo dim becomes the lane-dense GEMM output axis.
    """
    C, B, H, W = x_cbhw.shape
    xp = jnp.pad(x_cbhw, ((0, 0), (0, 0), (pad, pad), (pad, pad)))
    Ho = (H + 2 * pad - ksize) // stride + 1
    Wo = (W + 2 * pad - ksize) // stride + 1
    cols = [xp[:, :, kh:kh + stride * Ho:stride, kw:kw + stride * Wo:stride]
            for kh in range(ksize) for kw in range(ksize)]
    col = jnp.stack(cols, axis=1)                               # (C, K*K, B, Ho, Wo)
    return col.reshape(C * ksize * ksize, B * Ho * Wo), Ho, Wo


def conv2d_relu_cmajor(x_cbhw, w, b, stride=2, pad=1, out_dtype=jnp.bfloat16):
    """x: (C,B,H,W) channel-major ; w: (Cout,Cin,K,K).  Computed as (Cout,K)@(K,B*Ho*Wo):
    the output last dim is wide/lane-dense; bias is per-row (per output channel).
    Output stays channel-major (Cout, B*Ho*Wo) so the next conv needs no transpose."""
    Cout, Cin, K, _ = w.shape
    col, Ho, Wo = im2col_cmajor(x_cbhw, K, stride, pad)          # (Cin*K*K, B*Ho*Wo)
    wmat = w.reshape(Cout, Cin * K * K)
    out = matmul_bias(wmat, col, b, relu=True, bias_per_row=True,
                      out_dtype=out_dtype)                       # (Cout, B*Ho*Wo)
    return out, Ho, Wo


def init_params(key, *, in_ch=3, c1=16, c2=32, embed=128, hidden=128, vocab=256):
    keys = jax.random.split(key, 8)
    s = 0.05
    p = {}
    p["conv1_w"] = s * jax.random.normal(keys[0], (c1, in_ch, 3, 3), jnp.float32)
    p["conv1_b"] = jnp.zeros((c1,), jnp.float32)
    p["conv2_w"] = s * jax.random.normal(keys[1], (c2, c1, 3, 3), jnp.float32)
    p["conv2_b"] = jnp.zeros((c2,), jnp.float32)
    p["feat_w"] = s * jax.random.normal(keys[2], (c2, embed), jnp.float32)
    p["feat_b"] = jnp.zeros((embed,), jnp.float32)
    p["embed_w"] = s * jax.random.normal(keys[3], (vocab, embed), jnp.float32)
    p["lstm_wih"] = s * jax.random.normal(keys[4], (embed, 4 * hidden), jnp.float32)
    p["lstm_whh"] = s * jax.random.normal(keys[5], (hidden, 4 * hidden), jnp.float32)
    # NOTE: when porting trained PyTorch weights, lstm_b MUST be b_ih + b_hh.
    p["lstm_b"] = jnp.zeros((4 * hidden,), jnp.float32)
    p["out_w"] = s * jax.random.normal(keys[6], (hidden, vocab), jnp.float32)
    p["out_b"] = jnp.zeros((vocab,), jnp.float32)
    return p


def downsample_network(params, images):
    B = images.shape[0]
    x = jnp.transpose(images, (1, 0, 2, 3))                            # NCHW -> (C,B,H,W), once
    y1, H1, W1 = conv2d_relu_cmajor(x, params["conv1_w"], params["conv1_b"])     # (16, B*16*16) bf16
    y1 = y1.reshape(y1.shape[0], B, H1, W1)                            # free reshape, stays c-major
    y2, H2, W2 = conv2d_relu_cmajor(y1, params["conv2_w"], params["conv2_b"])    # (32, B*8*8) bf16
    C2 = y2.shape[0]
    # TODO(synk): the global-avg-pool + feature projection below are tiny XLA glue; they could
    # be fused into the conv2 kernel epilogue to drop one pallas_call + HBM round-trip.
    pooled = y2.reshape(C2, B, H2 * W2).astype(jnp.float32).mean(axis=2)         # (32, B)
    feats = matmul_bias(pooled.T, params["feat_w"], params["feat_b"])            # (B, embed) f32
    return feats


def _pack_indices(lengths_np, T, B):
    # pack_padded_sequence semantics: time-major packing over valid (t, b) positions.
    assert np.all(np.diff(lengths_np) <= 0), "lengths must be sorted descending (enforce_sorted=True)"
    idx = [t * B + b for t in range(T) for b in range(B) if t < int(lengths_np[b])]
    return np.asarray(idx, dtype=np.int32)


def sentence_decoder(params, features, sentences, lengths_np):
    B, L = sentences.shape
    emb = jnp.take(params["embed_w"], sentences, axis=0)               # (B, L, E) embedding (glue)
    seq = jnp.concatenate([features[:, None, :], emb], axis=1)         # (B, T, E), T = L+1
    T = L + 1
    E = seq.shape[-1]
    H = params["lstm_whh"].shape[0]

    # Hoisted input projection: one lane-dense (T*B, 4H) matmul, emitted bf16.
    seq_flat = jnp.transpose(seq, (1, 0, 2)).reshape(T * B, E)         # time-major flatten
    gates_x = matmul_bias(seq_flat, params["lstm_wih"], params["lstm_b"],
                          out_dtype=jnp.bfloat16).reshape(T, B, 4 * H)

    # Fused recurrence + hoisted vocab projection in a single kernel invocation.
    logits = lstm_decode(gates_x, params["lstm_whh"], params["out_w"], params["out_b"])  # (T*B,V)

    # pack_padded_sequence packing (host-side index build, single gather).
    # TODO(synk): output shape depends on `lengths`; a fixed-shape (T*B, V)+mask variant would
    # avoid recompiles when lengths change, but would not match PackedSequence.data semantics.
    idx = _pack_indices(np.asarray(lengths_np), T, B)
    return jnp.take(logits, jnp.asarray(idx), axis=0)


def sentence_generator_forward(params, images, sentences, lengths_np):
    feats = downsample_network(params, images)
    return sentence_decoder(params, feats, sentences, lengths_np)


# ----------------------- pure-f32 jnp reference (no Pallas) -------------------

def reference_forward(params, images, sentences, lengths_np):
    def conv(x_nchw, w, b):
        out = lax.conv_general_dilated(
            x_nchw, w, window_strides=(2, 2), padding=((1, 1), (1, 1)),
            dimension_numbers=("NCHW", "OIHW", "NCHW"))
        return jnp.maximum(out + b[None, :, None, None], 0.0)

    x = conv(images, params["conv1_w"], params["conv1_b"])
    x = conv(x, params["conv2_w"], params["conv2_b"])
    B, C, Ho, Wo = x.shape
    pooled = x.reshape(B, C, Ho * Wo).mean(axis=2)
    feats = pooled @ params["feat_w"] + params["feat_b"]

    emb = jnp.take(params["embed_w"], sentences, axis=0)
    seq = jnp.concatenate([feats[:, None, :], emb], axis=1)            # (B, T, E)
    T = seq.shape[1]
    H = params["lstm_whh"].shape[0]

    def step(carry, x_t):
        h, c = carry
        gates = x_t @ params["lstm_wih"] + params["lstm_b"] + h @ params["lstm_whh"]
        i = jax.nn.sigmoid(gates[:, 0 * H:1 * H])
        f = jax.nn.sigmoid(gates[:, 1 * H:2 * H])
        g = jnp.tanh(gates[:, 2 * H:3 * H])
        o = jax.nn.sigmoid(gates[:, 3 * H:4 * H])
        c = f * c + i * g
        h = o * jnp.tanh(c)
        return (h, c), h

    init = (jnp.zeros((B, H), jnp.float32), jnp.zeros((B, H), jnp.float32))
    _, hs = lax.scan(step, init, jnp.transpose(seq, (1, 0, 2)))        # (T, B, H)
    logits = hs @ params["out_w"] + params["out_b"]                    # (T, B, V)
    idx = _pack_indices(np.asarray(lengths_np), T, B)
    return logits.reshape(T * B, -1)[idx]


# --------------------------------- main --------------------------------------

if __name__ == "__main__":
    B, L = 8, 8
    VOCAB, EMBED, HIDDEN = 256, 128, 128

    params = init_params(jax.random.PRNGKey(0), embed=EMBED, hidden=HIDDEN, vocab=VOCAB)

    k1, k2 = jax.random.split(jax.random.PRNGKey(0), 2)
    images = jax.random.normal(k1, (B, 3, 32, 32), jnp.float32)        # NCHW
    sentences = jax.random.randint(k2, (B, L), 0, VOCAB, dtype=jnp.int32)
    lengths = np.array([9, 8, 7, 6, 5, 4, 3, 2], dtype=np.int32)       # sorted desc, <= L+1

    out = sentence_generator_forward(params, images, sentences, lengths)
    out = jax.block_until_ready(out)
    assert out.shape == (int(lengths.sum()), VOCAB), out.shape
    assert bool(jnp.all(jnp.isfinite(out)))

    ref = jax.block_until_ready(reference_forward(params, images, sentences, lengths))
    err = float(jnp.max(jnp.abs(out - ref)))
    assert err < 2e-2, f"max |pallas - f32 ref| = {err}"               # bf16-path tolerance

    print("KERNEL_OK")
</pallas_src>

<mosaic_0001>
module attributes {stable_mosaic.version = 11 : i64} {
  func.func @_matmul_bias_kernel(%arg0: i32, %arg1: memref<16x27xbf16, #tpu.memory_space<vmem>>, %arg2: memref<27x2048xbf16, #tpu.memory_space<vmem>>, %arg3: memref<16x1xf32, #tpu.memory_space<vmem>>, %arg4: memref<16x2048xbf16, #tpu.memory_space<vmem>>) attributes {dimension_semantics = [#tpu.dimension_semantics<parallel>], iteration_bounds = array<i64: 1>, scalar_prefetch = 0 : i64, scratch_operands = 0 : i64, tpu.core_type = #tpu.core_type<tc>, window_params = [{pipeline_mode = #tpu.pipeline_mode<synchronous>, transform_indices = @transform_0, window_bounds = array<i64: 16, 27>}, {transform_indices = @transform_1, window_bounds = array<i64: 27, 2048>}, {pipeline_mode = #tpu.pipeline_mode<synchronous>, transform_indices = @transform_2, window_bounds = array<i64: 16, 1>}, {transform_indices = @transform_3, window_bounds = array<i64: 16, 2048>}]} {
    %c0 = arith.constant 0 : index
    %c0_0 = arith.constant 0 : index
    %0 = vector.load %arg1[%c0, %c0_0] : memref<16x27xbf16, #tpu.memory_space<vmem>>, vector<16x27xbf16>
    %c0_1 = arith.constant 0 : index
    %c0_2 = arith.constant 0 : index
    %1 = vector.load %arg2[%c0_1, %c0_2] : memref<27x2048xbf16, #tpu.memory_space<vmem>>, vector<27x2048xbf16>
    %cst = arith.constant dense<0.000000e+00> : vector<16x2048xf32>
    %2 = tpu.matmul %0, %1, %cst {dimension_numbers = #tpu.dot_dimension_numbers<[1], [0], [0], [1], [0, 0, 1, 1], [], []>} : vector<16x27xbf16>, vector<27x2048xbf16>, vector<16x2048xf32> -> vector<16x2048xf32>
    %c0_3 = arith.constant 0 : index
    %c0_4 = arith.constant 0 : index
    %3 = vector.load %arg3[%c0_3, %c0_4] : memref<16x1xf32, #tpu.memory_space<vmem>>, vector<16x1xf32>
    %4 = vector.broadcast %3 : vector<16x1xf32> to vector<16x2048xf32>
    %5 = arith.addf %2, %4 : vector<16x2048xf32>
    %cst_5 = arith.constant 0.000000e+00 : f32
    %6 = vector.broadcast %cst_5 : f32 to vector<16x2048xf32>
    %7 = arith.maximumf %5, %6 : vector<16x2048xf32>
    %8 = arith.truncf %7 : vector<16x2048xf32> to vector<16x2048xbf16>
    %c0_6 = arith.constant 0 : index
    %c0_7 = arith.constant 0 : index
    %9 = vector.load %arg4[%c0_6, %c0_7] : memref<16x2048xbf16, #tpu.memory_space<vmem>>, vector<16x2048xbf16>
    tpu.vector_store %arg4[%c0_6, %c0_7], %8 {strides = array<i32>} : memref<16x2048xbf16, #tpu.memory_space<vmem>>, vector<16x2048xbf16>,
    return
  }
  func.func @transform_0(%arg0: i32) -> (i32, i32) {
    %c0_i32 = arith.constant 0 : i32
    %c0_i32_0 = arith.constant 0 : i32
    %c0_i32_1 = arith.constant 0 : i32
    return %c0_i32, %c0_i32_0 : i32, i32
  }
  func.func @transform_1(%arg0: i32) -> (i32, i32) {
    %c0_i32 = arith.constant 0 : i32
    %c0_i32_0 = arith.constant 0 : i32
    return %c0_i32, %arg0 : i32, i32
  }
  func.func @transform_2(%arg0: i32) -> (i32, i32) {
    %c0_i32 = arith.constant 0 : i32
    %c0_i32_0 = arith.constant 0 : i32
    %c0_i32_1 = arith.constant 0 : i32
    return %c0_i32, %c0_i32_0 : i32, i32
  }
  func.func @transform_3(%arg0: i32) -> (i32, i32) {
    %c0_i32 = arith.constant 0 : i32
    %c0_i32_0 = arith.constant 0 : i32
    return %c0_i32, %arg0 : i32, i32
  }
}

</mosaic_0001>

<bundles_post_ra>
// kernel: tpu_custom_call.1
= control target key start
LH: loop header
LB: loop body
LE: loop exit
PB: predicated region body
PF: predicated region fallthrough
CT: control target
= control target key end

     0   :  { %8 = vsyncpa [#allocation3], 0  ;;  %s1061_s0 = inlined_call_operand.vmem [shape: bf16[16,27], index: 0, kind: input, shape index: {}]   ;;  %s1062_s1 = inlined_call_operand.hbm [shape: bf16[27,2048], index: 1, kind: input, shape index: {}]   ;;  %s1063_s2 = inlined_call_operand.vmem [shape: f32[16,1], index: 2, kind: input, shape index: {}]   ;;  %s1064_s3 = inlined_call_operand.hbm [shape: bf16[16,2048], index: 3, kind: output, shape index: {}]  }
   0x1   :  { %9 = vsyncpa [#allocation4], 0  ;;  %s915_s12 = smov [#allocation2]   ;;  %s867_s16 = scalar_lea.hbm %s1062_s1, 4096 }
   0x2   :  { %s17_s13 = sshll.u32 %s915_s12, 4  ;;  %p868_p0 = scmp.ne.s32.totalorder %s1062_s1, %s867_s16  ;;  %s18_s13 = int_to_ptr.vmem [resolvable:$true] %s17_s13 }
   0x3   :  { %p871_p1 = scmp.lt.u32.totalorder %s867_s16, %s1062_s1 }
   0x5   :  { %p873_p2 = pnand %p871_p1, %p868_p0 }
   0x7   :  { %876 = shalt.err (!%p873_p2)
}
   0x8   :  { %s877_s21 = scalar_lea.vmem %s18_s13, 4096  ;;  %p882_p4 = scmp.lt.s32.totalorder %s18_s13, %s18_s13 }
   0x9   :  { %p878_p3 = scmp.ne.s32.totalorder %s18_s13, %s877_s21  ;;  %p883_p5 = scmp.lt.s32.totalorder %s877_s21, %s877_s21 }
   0xb   :  { %p884_p6 = por %p883_p5, %p882_p4 }
   0xd   :  { %p885_p7 = pnand %p884_p6, %p878_p3 }
   0xf   :  { %888 = shalt.err (!%p885_p7)
}
  0x10   :  { %s916_s22 = smov 1024   ;;  %s917_s23 = smov 64  }
  0x11   :  { %23 = dma.hbm_to_vmem [thread:$0]  %s1062_s1, 4096, %s18_s13, [#allocation3], %s916_s22, %s916_s22, %s917_s23  }
  0x12   :  { %911 = dma.done.wait [#allocation3], 4096  }
  0x13   :  { %912 = vsyncadd [#allocation3], 4294963200  ;;  %v918_v0 = vmov 0   ;;  %vm229_vm0 = vcmask 1044480   ;;  %vm230_vm1 = vcmask 1045504   ;;  %v919_v1 = vmov 65535  }
  0x14   :  { %313 = vmatprep.mubr.bf16.mxu0 %v918_v0  ;;  %356 = vmatprep.mubr.bf16.mxu1 %v918_v0  ;;  %v231_v2 = vsel %vm229_vm0, 4294967295, %v919_v1  ;;  %v32_v3 = vld [vmem:[#allocation2] sm:$0xff]  ;;  %v33_v5 = vld [vmem:[#allocation2 + $0x8] sm:$0xff]  ;;  %v34_v20 = vld [vmem:[#allocation2 + $0x10] sm:$0xff]  ;;  %vm225_vm2 = vcmask 220160  }
  0x15   :  { %865 = vset.pattern.permute.xlu0 %v918_v0  ;;  %v40_v4 = vld [vmem:[#allocation2 + $0x40] sm:$0xff]  ;;  %v41_v7 = vld [vmem:[#allocation2 + $0x48] sm:$0xff]  ;;  %v959_v11 = vsel %vm230_vm1, %v231_v2, 0  ;;  %v42_v23 = vld [vmem:[#allocation2 + $0x50] sm:$0xff] }
  0x16   :  { %v788_v6 = vcombine.high %v32_v3, %v40_v4  ;;  %v787_v8 = vcombine.low %v32_v3, %v40_v4  ;;  %v48_v9 = vld [vmem:[#allocation2 + $0x80] sm:$0xff]  ;;  %v790_v12 = vcombine.high %v33_v5, %v41_v7  ;;  %v789_v13 = vcombine.low %v33_v5, %v41_v7  ;;  %v49_v15 = vld [vmem:[#allocation2 + $0x88] sm:$0xff]  ;;  %v35_v24 = vld [vmem:[#allocation2 + $0x18] sm:$0xff] }
  0x17   :  { %v56_v10 = vld [vmem:[#allocation2 + $0xc0] sm:$0x33]  ;;  %v57_v16 = vld [vmem:[#allocation2 + $0xc8] sm:$0x33]  ;;  %v43_v25 = vld [vmem:[#allocation2 + $0x58] sm:$0xff]  ;;  %v792_v28 = vcombine.high %v34_v20, %v42_v23  ;;  %v791_v37 = vcombine.low %v34_v20, %v42_v23 }
  0x18   :  { %v804_v14 = vcombine.high %v48_v9, %v56_v10  ;;  %v803_v17 = vcombine.low %v48_v9, %v56_v10  ;;  %281 = vmatprep.subr.bf16.mxu0 %v788_v6  ;;  %v806_v18 = vcombine.high %v49_v15, %v57_v16  ;;  %v805_v19 = vcombine.low %v49_v15, %v57_v16  ;;  %v50_v29 = vld [vmem:[#allocation2 + $0x90] sm:$0xff]  ;;  %v51_v31 = vld [vmem:[#allocation2 + $0x98] sm:$0xff]  ;;  %v968_v35 = vld [vmem:[%s1061_s0] sm:$0xff]  }
  0x19   :  { %324 = vmatprep.subr.bf16.mxu1 %v790_v12  ;;  %282 = vmatpush1.bf16.msra.mxu0 %v787_v8  ;;  %v58_v30 = vld [vmem:[#allocation2 + $0xd0] sm:$0x33]  ;;  %v794_v32 = vcombine.high %v35_v24, %v43_v25  ;;  %v59_v34 = vld [vmem:[#allocation2 + $0xd8] sm:$0x33]  ;;  %v793_v39 = vcombine.low %v35_v24, %v43_v25  ;;  %v36_v42 = vld [vmem:[#allocation2 + $0x20] sm:$0xff] }
  0x1a   :  { %v237_v21 = vand.u32 %v804_v14, %v959_v11  ;;  %v234_v22 = vand.u32 %v803_v17, %v959_v11  ;;  %325 = vmatpush1.bf16.msra.mxu1 %v789_v13  ;;  %v243_v26 = vand.u32 %v806_v18, %v959_v11  ;;  %v240_v27 = vand.u32 %v805_v19, %v959_v11  ;;  %v44_v43 = vld [vmem:[#allocation2 + $0x60] sm:$0xff]  ;;  %v37_v45 = vld [vmem:[#allocation2 + $0x28] sm:$0xff]  ;;  %v38_v1 = vld [vmem:[#allocation2 + $0x30] sm:$0xff] }
  0x1b   :  { %v808_v33 = vcombine.high %v50_v29, %v58_v30  ;;  %v810_v36 = vcombine.high %v51_v31, %v59_v34  ;;  %v807_v38 = vcombine.low %v50_v29, %v58_v30  ;;  %v809_v41 = vcombine.low %v51_v31, %v59_v34  ;;  %v52_v46 = vld [vmem:[#allocation2 + $0xa0] sm:$0xff]  ;;  %v45_v48 = vld [vmem:[#allocation2 + $0x68] sm:$0xff]  ;;  %v46_v2 = vld [vmem:[#allocation2 + $0x70] sm:$0xff] }
  0x1c   :  { %283 = vmatprep.subr.bf16.mxu0 %v237_v21  ;;  %326 = vmatprep.subr.bf16.mxu1 %v243_v26  ;;  %v60_v47 = vld [vmem:[#allocation2 + $0xe0] sm:$0x33]  ;;  %v53_v49 = vld [vmem:[#allocation2 + $0xa8] sm:$0xff]  ;;  %v796_v54 = vcombine.high %v36_v42, %v44_v43  ;;  %v798_v56 = vcombine.high %v37_v45, %v45_v48  ;;  %v795_v58 = vcombine.low %v36_v42, %v44_v43  ;;  %v39_v4 = vld [vmem:[#allocation2 + $0x38] sm:$0xff] }
  0x1d   :  { %284 = vmatpush1.bf16.msra.mxu0 %v234_v22  ;;  %v249_v40 = vand.u32 %v808_v33, %v959_v11  ;;  %v255_v44 = vand.u32 %v810_v36, %v959_v11  ;;  %v61_v50 = vld [vmem:[#allocation2 + $0xe8] sm:$0x33]  ;;  %v246_v51 = vand.u32 %v807_v38, %v959_v11  ;;  %v64_v52 = vld [vmem:[%s1063_s2] sm:$0xff]  ;;  %v252_v53 = vand.u32 %v809_v41, %v959_v11  ;;  %v54_v5 = vld [vmem:[#allocation2 + $0xb0] sm:$0xff] }
  0x1e   :  { %327 = vmatpush1.bf16.msra.mxu1 %v240_v27  ;;  %367 = vmatprep.subr.bf16.mxu0 %v792_v28  ;;  %v812_v55 = vcombine.high %v52_v46, %v60_v47  ;;  %v814_v57 = vcombine.high %v53_v49, %v61_v50  ;;  %v811_v59 = vcombine.low %v52_v46, %v60_v47  ;;  %v65_v60 = vld [vmem:[%s1063_s2 + $0x8] sm:$0xff]  ;;  %v62_v6 = vld [vmem:[#allocation2 + $0xf0] sm:$0x33]  ;;  %v47_v7 = vld [vmem:[#allocation2 + $0x78] sm:$0xff]  ;;  %s920_s2 = smov [#allocation5]  }
  0x1f   :  { %410 = vmatprep.subr.bf16.mxu1 %v794_v32  ;;  %68 = vperm.xlu0 %865, %v64_v52   ;;  %v797_v61 = vcombine.low %v37_v45, %v45_v48  ;;  %v813_v63 = vcombine.low %v53_v49, %v61_v50  ;;  %v55_v8 = vld [vmem:[#allocation2 + $0xb8] sm:$0xff]  ;;  %v800_v13 = vcombine.high %v38_v1, %v46_v2  ;;  %s774_s30 = sshll.u32 %s920_s2, 4  ;;  %s775_s30 = int_to_ptr.vmem [resolvable:$true] %s774_s30 }
  0x20   :  { %819 = vmatmul.mubr.msk.bf16.vlgmr.msra.gmra.mrb[0].mxu0 %vm225_vm2, %v968_v35  ;;  %v261_v62 = vand.u32 %v812_v55, %v959_v11  ;;  %v267_v3 = vand.u32 %v814_v57, %v959_v11  ;;  %v63_v9 = vld [vmem:[#allocation2 + $0xf8] sm:$0x33]  ;;  %v258_v10 = vand.u32 %v811_v59, %v959_v11  ;;  %v816_v14 = vcombine.high %v54_v5, %v62_v6  ;;  %s889_s4 = scalar_lea.vmem %s775_s30, 2048  ;;  %p894_p9 = scmp.lt.s32.totalorder %s775_s30, %s775_s30 }
  0x21   :  { %820 = vmatmul.mubr.msk.bf16.vlgmr.msra.gmra.mrb[0].mxu1 %vm225_vm2, %v968_v35  ;;  %368 = vmatpush1.bf16.msra.mxu0 %v791_v37  ;;  %v264_v12 = vand.u32 %v813_v63, %v959_v11  ;;  %v802_v15 = vcombine.high %v39_v4, %v47_v7  ;;  %v818_v16 = vcombine.high %v55_v8, %v63_v9  ;;  %p890_p8 = scmp.ne.s32.totalorder %s775_s30, %s889_s4  ;;  %p895_p10 = scmp.lt.s32.totalorder %s889_s4, %s889_s4 }
  0x22   :  { %411 = vmatpush1.bf16.msra.mxu1 %v793_v39  ;;  %369 = vmatprep.subr.bf16.mxu0 %v249_v40  ;;  %v799_v17 = vcombine.low %v38_v1, %v46_v2  ;;  %v815_v18 = vcombine.low %v54_v5, %v62_v6  ;;  %v801_v19 = vcombine.low %v39_v4, %v47_v7 }
  0x23   :  { %412 = vmatprep.subr.bf16.mxu1 %v255_v44  ;;  %399 = vmatprep.mubr.bf16.mxu0 %v918_v0  ;;  %v273_v20 = vand.u32 %v816_v14, %v959_v11  ;;  %v817_v21 = vcombine.low %v55_v8, %v63_v9  ;;  %v279_v22 = vand.u32 %v818_v16, %v959_v11  ;;  %p896_p11 = por %p895_p10, %p894_p9 }
  0x24   :  { %442 = vmatprep.mubr.bf16.mxu1 %v918_v0  ;;  %73 = vperm.xlu0 %865, %v65_v60   ;;  %v270_v23 = vand.u32 %v815_v18, %v959_v11 }
  0x25   :  { %370 = vmatpush1.bf16.msra.mxu0 %v246_v51  ;;  %v276_v24 = vand.u32 %v817_v21, %v959_v11  ;;  %p897_p12 = pnand %p896_p11, %p890_p8 }
  0x26   :  { %413 = vmatpush1.bf16.msra.mxu1 %v252_v53  ;;  %453 = vmatprep.subr.bf16.mxu0 %v796_v54 }
  0x27   :  { %496 = vmatprep.subr.bf16.mxu1 %v798_v56 }
  0x28   :  { %821 = vmatmul.mubr.msk.bf16.vlgmr.msra.gmra.mrb[4].mxu0 %vm225_vm2, %v968_v35 }
  0x29   :  { %822 = vmatmul.mubr.msk.bf16.vlgmr.msra.gmra.mrb[4].mxu1 %vm225_vm2, %v968_v35  ;;  %454 = vmatpush1.bf16.msra.mxu0 %v795_v58 }
  0x2a   :  { %497 = vmatpush1.bf16.msra.mxu1 %v797_v61  ;;  %455 = vmatprep.subr.bf16.mxu0 %v261_v62 }
  0x2b   :  { %498 = vmatprep.subr.bf16.mxu1 %v267_v3  ;;  %485 = vmatprep.mubr.bf16.mxu0 %v918_v0 }
  0x2c   :  { %528 = vmatprep.mubr.bf16.mxu1 %v918_v0 }
  0x2d   :  { %456 = vmatpush1.bf16.msra.mxu0 %v258_v10 }
  0x2e   :  { %499 = vmatpush1.bf16.msra.mxu1 %v264_v12  ;;  %539 = vmatprep.subr.bf16.mxu0 %v800_v13 }
  0x2f   :  { %582 = vmatprep.subr.bf16.mxu1 %v802_v15 }
  0x30   :  { %823 = vmatmul.mubr.msk.bf16.vlgmr.msra.gmra.mrb[8].mxu0 %vm225_vm2, %v968_v35 }
  0x31   :  { %824 = vmatmul.mubr.msk.bf16.vlgmr.msra.gmra.mrb[8].mxu1 %vm225_vm2, %v968_v35  ;;  %540 = vmatpush1.bf16.msra.mxu0 %v799_v17 }
  0x32   :  { %583 = vmatpush1.bf16.msra.mxu1 %v801_v19  ;;  %541 = vmatprep.subr.bf16.mxu0 %v273_v20 }
  0x33   :  { %584 = vmatprep.subr.bf16.mxu1 %v279_v22  ;;  %571 = vmatprep.mubr.bf16.mxu0 %v918_v0 }
  0x34   :  { %614 = vmatprep.mubr.bf16.mxu1 %v918_v0 }
  0x35   :  { %542 = vmatpush1.bf16.msra.mxu0 %v270_v23 }
  0x36   :  { %585 = vmatpush1.bf16.msra.mxu1 %v276_v24 }
  0x38   :  { %825 = vmatmul.mubr.msk.bf16.vlgmr.msra.gmra.mrb[12].mxu0 %vm225_vm2, %v968_v35 }
  0x39   :  { %826 = vmatmul.mubr.msk.bf16.vlgmr.msra.gmra.mrb[12].mxu1 %vm225_vm2, %v968_v35 }
  0x9e   :  { %v1010_v25 = vpop.permute.xlu0 %68 }
  0xa3   :  { %v1012_v27 = vpop.permute.xlu0 %73 }
  0xf3   :  { %v315_v26 = vpop.f32.mrb[0].mxu0 }
  0xf4   :  { %v316_v11 = vadd.f32 %v315_v26, %v1010_v25  ;;  %v358_v28 = vpop.f32.mrb[0].mxu1  ;;  %v317_v29 = vpop.f32.mrb[1].mxu0 }
  0xf5   :  { %v359_v30 = vadd.f32 %v358_v28, %v1010_v25  ;;  %v318_v0 = vadd.f32 %v317_v29, %v1010_v25  ;;  %v360_v31 = vpop.f32.mrb[1].mxu1  ;;  %v319_v32 = vpop.f32.mrb[2].mxu0 }
  0xf6   :  { %v625_v33 = vmax.f32 %v316_v11, 0.0  ;;  %v361_v34 = vadd.f32 %v360_v31, %v1010_v25  ;;  %v320_v35 = vadd.f32 %v319_v32, %v1012_v27  ;;  %v362_v36 = vpop.f32.mrb[2].mxu1  ;;  %v321_v37 = vpop.f32.mrb[3].mxu0 }
  0xf7   :  { %v627_v38 = vmax.f32 %v359_v30, 0.0  ;;  %v626_v39 = vmax.f32 %v318_v0, 0.0  ;;  %v363_v40 = vadd.f32 %v362_v36, %v1012_v27  ;;  %v322_v41 = vadd.f32 %v321_v37, %v1012_v27  ;;  %v364_v42 = vpop.f32.mrb[3].mxu1 }
  0xf8   :  { %v628_v43 = vmax.f32 %v361_v34, 0.0  ;;  %v641_v44 = vmax.f32 %v320_v35, 0.0  ;;  %v365_v45 = vadd.f32 %v364_v42, %v1012_v27 }
  0xf9   :  { %v843_v46 = vpack.c.bf16 %v626_v39, %v625_v33  ;;  %v643_v47 = vmax.f32 %v363_v40, 0.0  ;;  %v642_v48 = vmax.f32 %v322_v41, 0.0 }
  0xfa   :  { %v844_v49 = vpack.c.bf16 %v628_v43, %v627_v38  ;;  %v644_v50 = vmax.f32 %v365_v45, 0.0 }
  0xfb   :  { %753 = vst [vmem:[#allocation5] sm:$0xff] %v843_v46  ;;  %v851_v51 = vpack.c.bf16 %v642_v48, %v641_v44  ;;  %v401_v52 = vpop.f32.mrb[4].mxu0 }
  0xfc   :  { %754 = vst [vmem:[#allocation5 + $0x8] sm:$0xff] %v844_v49  ;;  %v852_v53 = vpack.c.bf16 %v644_v50, %v643_v47  ;;  %v402_v54 = vadd.f32 %v401_v52, %v1010_v25  ;;  %v444_v55 = vpop.f32.mrb[4].mxu1  ;;  %v403_v56 = vpop.f32.mrb[5].mxu0 }
  0xfd   :  { %761 = vst [vmem:[#allocation5 + $0x40] sm:$0xff] %v851_v51  ;;  %v445_v57 = vadd.f32 %v444_v55, %v1010_v25  ;;  %v404_v58 = vadd.f32 %v403_v56, %v1010_v25  ;;  %v446_v59 = vpop.f32.mrb[5].mxu1  ;;  %v405_v60 = vpop.f32.mrb[6].mxu0 }
  0xfe   :  { %762 = vst [vmem:[#allocation5 + $0x48] sm:$0xff] %v852_v53  ;;  %v629_v61 = vmax.f32 %v402_v54, 0.0  ;;  %v447_v62 = vadd.f32 %v446_v59, %v1010_v25  ;;  %v406_v63 = vadd.f32 %v405_v60, %v1012_v27  ;;  %v448_v1 = vpop.f32.mrb[6].mxu1  ;;  %v407_v2 = vpop.f32.mrb[7].mxu0 }
  0xff   :  { %v631_v3 = vmax.f32 %v445_v57, 0.0  ;;  %v630_v4 = vmax.f32 %v404_v58, 0.0  ;;  %v449_v5 = vadd.f32 %v448_v1, %v1012_v27  ;;  %v408_v6 = vadd.f32 %v407_v2, %v1012_v27  ;;  %v450_v7 = vpop.f32.mrb[7].mxu1 }
 0x100   :  { %v632_v8 = vmax.f32 %v447_v62, 0.0  ;;  %v645_v9 = vmax.f32 %v406_v63, 0.0  ;;  %v451_v10 = vadd.f32 %v450_v7, %v1012_v27 }
 0x101   :  { %v845_v12 = vpack.c.bf16 %v630_v4, %v629_v61  ;;  %v647_v13 = vmax.f32 %v449_v5, 0.0  ;;  %v646_v14 = vmax.f32 %v408_v6, 0.0 }
 0x102   :  { %v846_v15 = vpack.c.bf16 %v632_v8, %v631_v3  ;;  %v648_v16 = vmax.f32 %v451_v10, 0.0 }
 0x103   :  { %755 = vst [vmem:[#allocation5 + $0x10] sm:$0xff] %v845_v12  ;;  %v853_v17 = vpack.c.bf16 %v646_v14, %v645_v9  ;;  %v487_v18 = vpop.f32.mrb[8].mxu0 }
 0x104   :  { %756 = vst [vmem:[#allocation5 + $0x18] sm:$0xff] %v846_v15  ;;  %v854_v19 = vpack.c.bf16 %v648_v16, %v647_v13  ;;  %v488_v20 = vadd.f32 %v487_v18, %v1010_v25  ;;  %v530_v21 = vpop.f32.mrb[8].mxu1  ;;  %v489_v22 = vpop.f32.mrb[9].mxu0 }
 0x105   :  { %763 = vst [vmem:[#allocation5 + $0x50] sm:$0xff] %v853_v17  ;;  %v531_v23 = vadd.f32 %v530_v21, %v1010_v25  ;;  %v490_v24 = vadd.f32 %v489_v22, %v1010_v25  ;;  %v532_v26 = vpop.f32.mrb[9].mxu1  ;;  %v491_v11 = vpop.f32.mrb[10].mxu0 }
 0x106   :  { %764 = vst [vmem:[#allocation5 + $0x58] sm:$0xff] %v854_v19  ;;  %v633_v28 = vmax.f32 %v488_v20, 0.0  ;;  %v533_v29 = vadd.f32 %v532_v26, %v1010_v25  ;;  %v492_v30 = vadd.f32 %v491_v11, %v1012_v27  ;;  %v534_v0 = vpop.f32.mrb[10].mxu1  ;;  %v493_v31 = vpop.f32.mrb[11].mxu0 }
 0x107   :  { %v635_v32 = vmax.f32 %v531_v23, 0.0  ;;  %v634_v33 = vmax.f32 %v490_v24, 0.0  ;;  %v535_v34 = vadd.f32 %v534_v0, %v1012_v27  ;;  %v494_v35 = vadd.f32 %v493_v31, %v1012_v27  ;;  %v536_v36 = vpop.f32.mrb[11].mxu1 }
 0x108   :  { %v636_v37 = vmax.f32 %v533_v29, 0.0  ;;  %v649_v38 = vmax.f32 %v492_v30, 0.0  ;;  %v537_v39 = vadd.f32 %v536_v36, %v1012_v27 }
 0x109   :  { %v847_v40 = vpack.c.bf16 %v634_v33, %v633_v28  ;;  %v651_v41 = vmax.f32 %v535_v34, 0.0  ;;  %v650_v42 = vmax.f32 %v494_v35, 0.0 }
 0x10a   :  { %v848_v43 = vpack.c.bf16 %v636_v37, %v635_v32  ;;  %v652_v44 = vmax.f32 %v537_v39, 0.0 }
 0x10b   :  { %757 = vst [vmem:[#allocation5 + $0x20] sm:$0xff] %v847_v40  ;;  %v855_v45 = vpack.c.bf16 %v650_v42, %v649_v38  ;;  %v573_v46 = vpop.f32.mrb[12].mxu0 }
 0x10c   :  { %758 = vst [vmem:[#allocation5 + $0x28] sm:$0xff] %v848_v43  ;;  %v856_v47 = vpack.c.bf16 %v652_v44, %v651_v41  ;;  %v574_v48 = vadd.f32 %v573_v46, %v1010_v25  ;;  %v616_v49 = vpop.f32.mrb[12].mxu1  ;;  %v575_v50 = vpop.f32.mrb[13].mxu0 }
 0x10d   :  { %765 = vst [vmem:[#allocation5 + $0x60] sm:$0xff] %v855_v45  ;;  %v617_v51 = vadd.f32 %v616_v49, %v1010_v25  ;;  %v576_v52 = vadd.f32 %v575_v50, %v1010_v25  ;;  %v618_v53 = vpop.f32.mrb[13].mxu1  ;;  %v577_v54 = vpop.f32.mrb[14].mxu0 }
 0x10e   :  { %766 = vst [vmem:[#allocation5 + $0x68] sm:$0xff] %v856_v47  ;;  %v637_v55 = vmax.f32 %v574_v48, 0.0  ;;  %v619_v56 = vadd.f32 %v618_v53, %v1010_v25  ;;  %v578_v57 = vadd.f32 %v577_v54, %v1012_v27  ;;  %v620_v58 = vpop.f32.mrb[14].mxu1  ;;  %v579_v59 = vpop.f32.mrb[15].mxu0 }
 0x10f   :  { %v639_v60 = vmax.f32 %v617_v51, 0.0  ;;  %v638_v61 = vmax.f32 %v576_v52, 0.0  ;;  %v621_v62 = vadd.f32 %v620_v58, %v1012_v27  ;;  %v580_v63 = vadd.f32 %v579_v59, %v1012_v27  ;;  %v622_v1 = vpop.f32.mrb[15].mxu1 }
 0x110   :  { %v640_v2 = vmax.f32 %v619_v56, 0.0  ;;  %v653_v3 = vmax.f32 %v578_v57, 0.0  ;;  %v623_v4 = vadd.f32 %v622_v1, %v1012_v27 }
 0x111   :  { %v849_v5 = vpack.c.bf16 %v638_v61, %v637_v55  ;;  %v655_v6 = vmax.f32 %v621_v62, 0.0  ;;  %v654_v7 = vmax.f32 %v580_v63, 0.0 }
 0x112   :  { %v850_v25 = vpack.c.bf16 %v640_v2, %v639_v60  ;;  %v656_v8 = vmax.f32 %v623_v4, 0.0 }
 0x113   :  { %759 = vst [vmem:[#allocation5 + $0x30] sm:$0xff] %v849_v5  ;;  %v857_v9 = vpack.c.bf16 %v654_v7, %v653_v3 }
 0x114   :  { %760 = vst [vmem:[#allocation5 + $0x38] sm:$0xff] %v850_v25  ;;  %v858_v10 = vpack.c.bf16 %v656_v8, %v655_v6 }
 0x115   :  { %767 = vst [vmem:[#allocation5 + $0x70] sm:$0xff] %v857_v9 }
 0x116   :  { %768 = vst [vmem:[#allocation5 + $0x78] sm:$0xff] %v858_v10 }
 0x117   :  { %900 = shalt.err (!%p897_p12)
}
 0x118   :  { %s901_s7 = scalar_lea.hbm %s1064_s3, 2048 }
 0x119   :  { %p902_p13 = scmp.ne.s32.totalorder %s1064_s3, %s901_s7  ;;  %p905_p0 = scmp.lt.u32.totalorder %s901_s7, %s1064_s3 }
 0x11b   :  { %p907_p1 = pnand %p905_p0, %p902_p13 }
 0x11d   :  { %910 = shalt.err (!%p907_p1)
}
 0x11e   :  { %780 = dma.vmem_to_hbm [thread:$0]  %s775_s30, 2048, %s1064_s3, [#allocation4], %s916_s22, %s916_s22, %s917_s23  }
 0x11f   :  { %913 = dma.done.wait [#allocation4], 2048  }
 0x120   :  { %914 = vsyncadd [#allocation4], 4294965248 }
 0x121   :  { %784 = vsyncpa [#allocation3], 1 }
 0x122   :  { %785 = vsyncpa [#allocation4], 1 }

</bundles_post_ra>
